<compile_context>
chip_gen: v7x
topology: tpu7x:2x2x1
jax: 0.10.0
libtpu: 0.0.40
codegen_flags: <defaults>
</compile_context>

<pallas_src>
import jax
import jax.numpy as jnp
from jax import lax
from jax.experimental import pallas as pl
from jax.experimental.pallas import tpu as pltpu

LANES = 128
COMPUTE_DTYPE = jnp.bfloat16          # matmul operand dtype (fp32 accumulation)
VMEM_LIMIT = 48 * 1024 * 1024         # safe on v5e/v6e (128 MiB) and v7x (64 MiB)


def _row_tile(rows, max_tile):
    """Row-tile size: multiple of 8 (sublane) and <= max_tile."""
    r8 = ((rows + 7) // 8) * 8
    return min(max_tile, r8)


# ---------------------------------------------------------------------------
# Conv2d(3x3, pad=1) + BatchNorm2d (eval mode, folded into W/b) + ReLU,
# as a row-tiled matmul over im2col patches (patch extraction is slicing glue).
# ---------------------------------------------------------------------------
def conv_bn_relu_kernel(patch_ref, w_ref, b_ref, out_ref):
    acc = jnp.dot(patch_ref[...], w_ref[...], preferred_element_type=jnp.float32)
    out_ref[...] = jnp.maximum(acc + b_ref[...], 0.0)


def conv_bn_relu(x_nhwc, w, b, bn_params, eps=1e-5, tile_rows=512):
    # x_nhwc: (B, H, W, Cin); w: (3, 3, Cin, Cout)
    gamma, beta, mean, var = bn_params
    B, H, W, Cin = x_nhwc.shape
    Cout = w.shape[-1]

    # Fold BatchNorm (eval mode) into conv weights/bias.
    scale = gamma / jnp.sqrt(var + eps)
    shift = beta - mean * scale
    w_f = w * scale                       # broadcast over Cout
    b_f = b * scale + shift

    # im2col; patch channel order (kh, kw, ci) matches w_f.reshape below.
    xp = jnp.pad(x_nhwc, ((0, 0), (1, 1), (1, 1), (0, 0)))
    patches = jnp.concatenate(
        [xp[:, kh:kh + H, kw:kw + W, :] for kh in range(3) for kw in range(3)],
        axis=-1).reshape(B * H * W, 9 * Cin)
    K = 9 * Cin

    # Lane-pad the narrow Cout output to 128 lanes (unmasked stores).
    Cpad = ((Cout + LANES - 1) // LANES) * LANES
    w2d = jnp.zeros((K, Cpad), jnp.float32).at[:, :Cout].set(w_f.reshape(K, Cout))
    b2d = jnp.zeros((1, Cpad), jnp.float32).at[:, :Cout].set(b_f.reshape(1, Cout))

    R = B * H * W
    TM = _row_tile(R, tile_rows)
    Rpad = pl.cdiv(R, TM) * TM
    if Rpad != R:
        patches = jnp.pad(patches, ((0, Rpad - R), (0, 0)))

    out = pl.pallas_call(
        conv_bn_relu_kernel,
        out_shape=jax.ShapeDtypeStruct((Rpad, Cpad), jnp.float32),
        grid=(Rpad // TM,),
        in_specs=[pl.BlockSpec((TM, K), lambda i: (i, 0)),
                  pl.BlockSpec((K, Cpad), lambda i: (0, 0)),
                  pl.BlockSpec((1, Cpad), lambda i: (0, 0))],
        out_specs=pl.BlockSpec((TM, Cpad), lambda i: (i, 0)),
        compiler_params=pltpu.CompilerParams(
            dimension_semantics=("parallel",),
            vmem_limit_bytes=VMEM_LIMIT),
    )(patches, w2d, b2d)
    return out[:R, :Cout].reshape(B, H, W, Cout)


# ---------------------------------------------------------------------------
# One unidirectional LSTM layer (PyTorch gate order i, f, g, o), time-chunked.
# h/c carried in VMEM scratch across grid steps; x @ W_ih hoisted per chunk.
# ---------------------------------------------------------------------------
def lstm_layer_kernel(x_ref, wih_ref, whh_ref, b_ref, out_ref,
                      h_scr, c_scr, gx_scr):
    Tc, Bp, D = x_ref.shape
    H = h_scr.shape[1]

    @pl.when(pl.program_id(0) == 0)
    def _():
        h_scr[...] = jnp.zeros_like(h_scr)
        c_scr[...] = jnp.zeros_like(c_scr)

    # Hoisted input projection + bias for the whole chunk (one big MXU matmul).
    x_flat = x_ref[...].reshape(Tc * Bp, D).astype(wih_ref.dtype)
    gates_x = (jnp.dot(x_flat, wih_ref[...], preferred_element_type=jnp.float32)
               + b_ref[...])
    gx_scr[...] = gates_x.reshape(Tc, Bp, 4 * H)

    def step(t, carry):
        gates = gx_scr[t] + jnp.dot(h_scr[...].astype(whh_ref.dtype),
                                    whh_ref[...],
                                    preferred_element_type=jnp.float32)
        i_g = jax.nn.sigmoid(gates[:, 0:H])
        f_g = jax.nn.sigmoid(gates[:, H:2 * H])
        g_g = jnp.tanh(gates[:, 2 * H:3 * H])
        o_g = jax.nn.sigmoid(gates[:, 3 * H:4 * H])
        c_new = f_g * c_scr[...] + i_g * g_g
        h_new = o_g * jnp.tanh(c_new)
        c_scr[...] = c_new
        h_scr[...] = h_new
        out_ref[t] = h_new
        return carry

    lax.fori_loop(0, Tc, step, 0)


def lstm_layer(x_tbd, w_ih, w_hh, b_ih, b_hh, time_chunk=64):
    # x_tbd: (T, B, D); w_ih: (4H, D); w_hh: (4H, H)   (PyTorch parameter layout)
    T, B, D = x_tbd.shape
    H = w_hh.shape[1]

    Bp = max(8, ((B + 7) // 8) * 8)            # sublane-pad the batch
    Tc = min(time_chunk, T)
    Tpad = pl.cdiv(T, Tc) * Tc
    x = x_tbd
    if Bp != B or Tpad != T:
        x = jnp.pad(x, ((0, Tpad - T), (0, Bp - B), (0, 0)))

    wih_t = w_ih.T.astype(COMPUTE_DTYPE)       # (D, 4H)
    whh_t = w_hh.T.astype(COMPUTE_DTYPE)       # (H, 4H)
    b = (b_ih + b_hh).reshape(1, 4 * H).astype(jnp.float32)

    out = pl.pallas_call(
        lstm_layer_kernel,
        out_shape=jax.ShapeDtypeStruct((Tpad, Bp, H), jnp.float32),
        grid=(Tpad // Tc,),
        in_specs=[pl.BlockSpec((Tc, Bp, D), lambda i: (i, 0, 0)),
                  pl.BlockSpec((D, 4 * H), lambda i: (0, 0)),
                  pl.BlockSpec((H, 4 * H), lambda i: (0, 0)),
                  pl.BlockSpec((1, 4 * H), lambda i: (0, 0))],
        out_specs=pl.BlockSpec((Tc, Bp, H), lambda i: (i, 0, 0)),
        scratch_shapes=[pltpu.VMEM((Bp, H), jnp.float32),
                        pltpu.VMEM((Bp, H), jnp.float32),
                        pltpu.VMEM((Tc, Bp, 4 * H), jnp.float32)],
        compiler_params=pltpu.CompilerParams(
            dimension_semantics=("arbitrary",),      # h/c carried across chunks
            vmem_limit_bytes=VMEM_LIMIT),
    )(x, wih_t, whh_t, b)
    return out[:T, :B, :]


# ---------------------------------------------------------------------------
# Fully-connected head: Linear -> ReLU -> Linear -> ReLU -> Linear -> log_softmax
# Row-tiled; token dim padded to 128 lanes (padded biases set to -1e30).
# ---------------------------------------------------------------------------
def mlp_logsoftmax_kernel(x_ref, w1, b1, w2, b2, w3, b3, out_ref):
    h = jnp.dot(x_ref[...].astype(w1.dtype), w1[...],
                preferred_element_type=jnp.float32) + b1[...]
    h = jnp.maximum(h, 0.0)
    h = jnp.dot(h.astype(w2.dtype), w2[...],
                preferred_element_type=jnp.float32) + b2[...]
    h = jnp.maximum(h, 0.0)
    logits = jnp.dot(h.astype(w3.dtype), w3[...],
                     preferred_element_type=jnp.float32) + b3[...]
    m = jnp.max(logits, axis=-1, keepdims=True)
    lse = m + jnp.log(jnp.sum(jnp.exp(logits - m), axis=-1, keepdims=True))
    out_ref[...] = logits - lse


def mlp_logsoftmax(x_rows, params, n_tokens, tile_rows=512):
    R, H = x_rows.shape
    fc_hidden = params["fc1_w"].shape[1]
    Npad = ((n_tokens + LANES - 1) // LANES) * LANES

    w1 = params["fc1_w"].astype(COMPUTE_DTYPE)
    b1 = params["fc1_b"].astype(jnp.float32)
    w2 = params["fc2_w"].astype(COMPUTE_DTYPE)
    b2 = params["fc2_b"].astype(jnp.float32)
    # Pad final layer to 128 lanes; padded biases = -1e30 so the padded logits
    # contribute nothing to the softmax.
    w3 = jnp.zeros((fc_hidden, Npad), COMPUTE_DTYPE).at[:, :n_tokens].set(
        params["fc3_w"].astype(COMPUTE_DTYPE))
    b3 = jnp.full((1, Npad), -1e30, jnp.float32).at[:, :n_tokens].set(
        params["fc3_b"].astype(jnp.float32))

    TM = _row_tile(R, tile_rows)
    Rpad = pl.cdiv(R, TM) * TM
    x = x_rows if Rpad == R else jnp.pad(x_rows, ((0, Rpad - R), (0, 0)))

    out = pl.pallas_call(
        mlp_logsoftmax_kernel,
        out_shape=jax.ShapeDtypeStruct((Rpad, Npad), jnp.float32),
        grid=(Rpad // TM,),
        in_specs=[pl.BlockSpec((TM, H), lambda i: (i, 0)),
                  pl.BlockSpec((H, fc_hidden), lambda i: (0, 0)),
                  pl.BlockSpec((1, fc_hidden), lambda i: (0, 0)),
                  pl.BlockSpec((fc_hidden, fc_hidden), lambda i: (0, 0)),
                  pl.BlockSpec((1, fc_hidden), lambda i: (0, 0)),
                  pl.BlockSpec((fc_hidden, Npad), lambda i: (0, 0)),
                  pl.BlockSpec((1, Npad), lambda i: (0, 0))],
        out_specs=pl.BlockSpec((TM, Npad), lambda i: (i, 0)),
        compiler_params=pltpu.CompilerParams(
            dimension_semantics=("parallel",),
            vmem_limit_bytes=VMEM_LIMIT),
    )(x, w1, b1, w2, b2, w3, b3)
    return out[:R, :n_tokens]


# ---------------------------------------------------------------------------
# Parameters (deterministic synthetic init; LSTM biases zero as in the module).
# ---------------------------------------------------------------------------
def init_params(key, n_feats, n_tokens, input_channels=1, output_channels=4,
                rnn_hidden=512, rnn_layers=4, fc_hidden=512):
    num_keys = 12 + 2 * rnn_layers + 6          # exact count of nrm() calls
    ks = iter(jax.random.split(key, num_keys))

    def nrm(shape, scale):
        return scale * jax.random.normal(next(ks), shape, dtype=jnp.float32)

    def bn_init():
        gamma = 1.0 + nrm((output_channels,), 0.05)
        beta = nrm((output_channels,), 0.05)
        mean = nrm((output_channels,), 0.05)
        var = 1.0 + jnp.abs(nrm((output_channels,), 0.05))
        return (gamma, beta, mean, var)

    params = {
        "conv1_w": nrm((3, 3, input_channels, output_channels), 0.2),
        "conv1_b": nrm((output_channels,), 0.05),
        "bn1": bn_init(),
        "conv2_w": nrm((3, 3, output_channels, output_channels), 0.2),
        "conv2_b": nrm((output_channels,), 0.05),
        "bn2": bn_init(),
    }

    rnn = []
    d_in = n_feats * output_channels
    for _ in range(rnn_layers):
        w_ih = nrm((4 * rnn_hidden, d_in), (2.0 / (4 * rnn_hidden + d_in)) ** 0.5)
        w_hh = nrm((4 * rnn_hidden, rnn_hidden), (2.0 / (5 * rnn_hidden)) ** 0.5)
        b_ih = jnp.zeros((4 * rnn_hidden,), jnp.float32)
        b_hh = jnp.zeros((4 * rnn_hidden,), jnp.float32)
        rnn.append((w_ih, w_hh, b_ih, b_hh))
        d_in = rnn_hidden
    params["rnn"] = rnn

    params["fc1_w"] = nrm((rnn_hidden, fc_hidden), 0.05)
    params["fc1_b"] = nrm((1, fc_hidden), 0.02)
    params["fc2_w"] = nrm((fc_hidden, fc_hidden), 0.05)
    params["fc2_b"] = nrm((1, fc_hidden), 0.02)
    params["fc3_w"] = nrm((fc_hidden, n_tokens), 0.05)
    params["fc3_b"] = nrm((1, n_tokens), 0.02)
    return params


# ---------------------------------------------------------------------------
# Full forward pass (mirrors DeepSpeech2.forward).
# ---------------------------------------------------------------------------
def deep_speech2_forward(params, spectrogram, spectrogram_length,
                         augmented_spectrogram):
    # unsqueeze(dim=1) in NCHW == add trailing channel in NHWC
    x = augmented_spectrogram[..., None]                       # (B, F, T, 1)
    # TODO(synk): BatchNorm2d is applied in inference mode (folded running
    # stats); training-mode batch statistics are not implemented.
    x = conv_bn_relu(x, params["conv1_w"], params["conv1_b"], params["bn1"])
    x = conv_bn_relu(x, params["conv2_w"], params["conv2_b"], params["bn2"])

    B, F, T, C = x.shape
    # NCHW permute(0,3,1,2).view(B, T, C*F) (channel-major flatten); the
    # layout transposes are left to XLA (small relative to the LSTM stack).
    x = jnp.transpose(x, (0, 2, 3, 1)).reshape(B, T, C * F)
    x = jnp.transpose(x, (1, 0, 2))                            # (T, B, C*F)

    for layer_params in params["rnn"]:
        x = lstm_layer(x, *layer_params)                       # (T, B, H)

    x = jnp.transpose(x, (1, 0, 2))                            # (B, T, H)
    H = x.shape[-1]
    n_tokens = params["fc3_w"].shape[1]
    flat = x.reshape(B * T, H)
    log_probs = mlp_logsoftmax(flat, params, n_tokens).reshape(B, T, n_tokens)

    # transform_input_lengths is the identity in the reference module.
    return {"log_probs": log_probs, "log_probs_length": spectrogram_length}


if __name__ == "__main__":
    B, n_feats, T = 2, 16, 8
    n_tokens = 28
    rnn_hidden = 32
    rnn_layers = 2

    key = jax.random.PRNGKey(0)
    k_param, k_data = jax.random.split(key)
    params = init_params(k_param, n_feats, n_tokens,
                         rnn_hidden=rnn_hidden, rnn_layers=rnn_layers)

    spectrogram = jax.random.normal(k_data, (B, n_feats, T), dtype=jnp.float32)
    spectrogram_length = jnp.full((B,), T, dtype=jnp.int32)

    out = deep_speech2_forward(params, spectrogram, spectrogram_length,
                               augmented_spectrogram=spectrogram)
    jax.block_until_ready(out["log_probs"])
    jax.block_until_ready(out["log_probs_length"])

    assert out["log_probs"].shape == (B, T, n_tokens)
    assert out["log_probs_length"].shape == (B,)
    # log_softmax sanity: probabilities sum to ~1 along the token axis
    probs_sum = jnp.exp(out["log_probs"]).sum(-1)
    assert jnp.allclose(probs_sum, 1.0, atol=1e-4)

    print("KERNEL_OK")
</pallas_src>

<mosaic_0001>
module attributes {stable_mosaic.version = 11 : i64} {
  func.func @conv_bn_relu_kernel(%arg0: i32, %arg1: memref<256x9xf32, #tpu.memory_space<vmem>>, %arg2: memref<9x128xf32, #tpu.memory_space<vmem>>, %arg3: memref<1x128xf32, #tpu.memory_space<vmem>>, %arg4: memref<256x128xf32, #tpu.memory_space<vmem>>) attributes {dimension_semantics = [#tpu.dimension_semantics<parallel>], iteration_bounds = array<i64: 1>, scalar_prefetch = 0 : i64, scratch_operands = 0 : i64, tpu.core_type = #tpu.core_type<tc>, window_params = [{transform_indices = @transform_0, window_bounds = array<i64: 256, 9>}, {pipeline_mode = #tpu.pipeline_mode<synchronous>, transform_indices = @transform_1, window_bounds = array<i64: 9, 128>}, {pipeline_mode = #tpu.pipeline_mode<synchronous>, transform_indices = @transform_2, window_bounds = array<i64: 1, 128>}, {transform_indices = @transform_3, window_bounds = array<i64: 256, 128>}]} {
    %c0 = arith.constant 0 : index
    %c0_0 = arith.constant 0 : index
    %0 = vector.load %arg1[%c0, %c0_0] : memref<256x9xf32, #tpu.memory_space<vmem>>, vector<256x9xf32>
    %c0_1 = arith.constant 0 : index
    %c0_2 = arith.constant 0 : index
    %1 = vector.load %arg2[%c0_1, %c0_2] : memref<9x128xf32, #tpu.memory_space<vmem>>, vector<9x128xf32>
    %cst = arith.constant dense<0.000000e+00> : vector<256x128xf32>
    %2 = tpu.matmul %0, %1, %cst {dimension_numbers = #tpu.dot_dimension_numbers<[1], [0], [0], [1], [0, 0, 1, 1], [], []>} : vector<256x9xf32>, vector<9x128xf32>, vector<256x128xf32> -> vector<256x128xf32>
    %c0_3 = arith.constant 0 : index
    %c0_4 = arith.constant 0 : index
    %3 = vector.load %arg3[%c0_3, %c0_4] : memref<1x128xf32, #tpu.memory_space<vmem>>, vector<1x128xf32>
    %4 = vector.broadcast %3 : vector<1x128xf32> to vector<256x128xf32>
    %5 = arith.addf %2, %4 : vector<256x128xf32>
    %cst_5 = arith.constant 0.000000e+00 : f32
    %6 = vector.broadcast %cst_5 : f32 to vector<256x128xf32>
    %7 = arith.maximumf %5, %6 : vector<256x128xf32>
    %c0_6 = arith.constant 0 : index
    %c0_7 = arith.constant 0 : index
    %8 = vector.load %arg4[%c0_6, %c0_7] : memref<256x128xf32, #tpu.memory_space<vmem>>, vector<256x128xf32>
    tpu.vector_store %arg4[%c0_6, %c0_7], %7 {strides = array<i32>} : memref<256x128xf32, #tpu.memory_space<vmem>>, vector<256x128xf32>,
    return
  }
  func.func @transform_0(%arg0: i32) -> (i32, i32) {
    %c0_i32 = arith.constant 0 : i32
    %c0_i32_0 = arith.constant 0 : i32
    return %arg0, %c0_i32 : i32, i32
  }
  func.func @transform_1(%arg0: i32) -> (i32, i32) {
    %c0_i32 = arith.constant 0 : i32
    %c0_i32_0 = arith.constant 0 : i32
    %c0_i32_1 = arith.constant 0 : i32
    return %c0_i32, %c0_i32_0 : i32, i32
  }
  func.func @transform_2(%arg0: i32) -> (i32, i32) {
    %c0_i32 = arith.constant 0 : i32
    %c0_i32_0 = arith.constant 0 : i32
    %c0_i32_1 = arith.constant 0 : i32
    return %c0_i32, %c0_i32_0 : i32, i32
  }
  func.func @transform_3(%arg0: i32) -> (i32, i32) {
    %c0_i32 = arith.constant 0 : i32
    %c0_i32_0 = arith.constant 0 : i32
    return %arg0, %c0_i32 : i32, i32
  }
}

</mosaic_0001>

<bundles_post_ra>
// kernel: tpu_custom_call.1
= control target key start
LH: loop header
LB: loop body
LE: loop exit
PB: predicated region body
PF: predicated region fallthrough
CT: control target
= control target key end

     0   :  { %vm153_vm0 = vcmask 1040384   ;;  %vm618_vm1 = vmmov 1   ;;  %vm56_vm3 = vcmask 72704   ;;  %s825_s0 = inlined_call_operand.vmem [shape: f32[256,9], index: 0, kind: input, shape index: {}]   ;;  %s826_s1 = inlined_call_operand.vmem [shape: f32[9,128], index: 1, kind: input, shape index: {}]   ;;  %s827_s2 = inlined_call_operand.vmem [shape: f32[1,128], index: 2, kind: input, shape index: {}]   ;;  %s828_s3 = inlined_call_operand.hbm [shape: f32[256,128], index: 3, kind: output, shape index: {}]  }
   0x1   :  { %v47_v0 = vld [vmem:[%s826_s1] sm:$0xff]  ;;  %v48_v1 = vld [vmem:[%s826_s1 + $0x8] sm:$0x1]  ;;  %vm583_vm2 = vmpackc.low %vm153_vm0, %vm618_vm1 }
   0x2   :  { %v15_v2 = vld [vmem:[%s825_s0] sm:$0xff]  ;;  %v582_v3 = vpack.c.bf16 %v48_v1, %v47_v0  ;;  %v16_v5 = vld [vmem:[%s825_s0 + $0x8] sm:$0xff]  ;;  %v17_v7 = vld [vmem:[%s825_s0 + $0x10] sm:$0xff] }
   0x3   :  { %v31_v4 = vld [vmem:[%s825_s0 + $0x80] sm:$0xff]  ;;  %534 = vmatprep.mubr.msk.f32.mxu0 %vm56_vm3, %v15_v2  ;;  %v32_v6 = vld [vmem:[%s825_s0 + $0x88] sm:$0xff]  ;;  %v33_v8 = vld [vmem:[%s825_s0 + $0x90] sm:$0xff] }
   0x4   :  { %558 = vmatprep.mubr.msk.f32.mxu1 %vm56_vm3, %v31_v4  ;;  %584 = vmatprep.subr.msk.bf16.mxu0 %vm583_vm2, %v582_v3  ;;  %v18_v9 = vld [vmem:[%s825_s0 + $0x18] sm:$0xff]  ;;  %v19_v11 = vld [vmem:[%s825_s0 + $0x20] sm:$0xff] }
   0x5   :  { %588 = vmatprep.subr.msk.bf16.mxu1 %vm583_vm2, %v582_v3  ;;  %587 = vmatpush3.bf16.msk.msra.mxu0 %vm583_vm2, %v582_v3  ;;  %v34_v10 = vld [vmem:[%s825_s0 + $0x98] sm:$0xff]  ;;  %v35_v12 = vld [vmem:[%s825_s0 + $0xa0] sm:$0xff] }
   0x6   :  { %589 = vmatpush3.bf16.msk.msra.mxu1 %vm583_vm2, %v582_v3 }
   0x8   :  { %535 = vmatmul.mubr.msk.f32.vlgmr.msra.gmra.mrb[0].mxu0 %vm56_vm3, %v16_v5 }
   0x9   :  { %559 = vmatmul.mubr.msk.f32.vlgmr.msra.gmra.mrb[0].mxu1 %vm56_vm3, %v32_v6  ;;  %537 = vmatprep.mubr.msk.f32.mxu0 %vm56_vm3, %v17_v7 }
   0xa   :  { %561 = vmatprep.mubr.msk.f32.mxu1 %vm56_vm3, %v33_v8 }
   0xc   :  { %538 = vmatmul.mubr.msk.f32.gmra.mrb[2].mxu0 %vm56_vm3, %v18_v9 }
   0xd   :  { %562 = vmatmul.mubr.msk.f32.gmra.mrb[2].mxu1 %vm56_vm3, %v34_v10 }
   0xe   :  { %8 = vsyncpa [#allocation3], 0  ;;  %540 = vmatprep.mubr.msk.f32.mxu0 %vm56_vm3, %v19_v11  ;;  %564 = vmatprep.mubr.msk.f32.mxu1 %vm56_vm3, %v35_v12  ;;  %v20_v13 = vld [vmem:[%s825_s0 + $0x28] sm:$0xff]  ;;  %v21_v15 = vld [vmem:[%s825_s0 + $0x30] sm:$0xff] }
   0xf   :  { %v36_v14 = vld [vmem:[%s825_s0 + $0xa8] sm:$0xff]  ;;  %v37_v16 = vld [vmem:[%s825_s0 + $0xb0] sm:$0xff]  ;;  %v22_v17 = vld [vmem:[%s825_s0 + $0x38] sm:$0xff] }
  0x10   :  { %541 = vmatmul.mubr.msk.f32.gmra.mrb[4].mxu0 %vm56_vm3, %v20_v13  ;;  %v38_v18 = vld [vmem:[%s825_s0 + $0xb8] sm:$0xff]  ;;  %v23_v19 = vld [vmem:[%s825_s0 + $0x40] sm:$0xff]  ;;  %v24_v21 = vld [vmem:[%s825_s0 + $0x48] sm:$0xff] }
  0x11   :  { %565 = vmatmul.mubr.msk.f32.gmra.mrb[4].mxu1 %vm56_vm3, %v36_v14  ;;  %543 = vmatprep.mubr.msk.f32.mxu0 %vm56_vm3, %v21_v15  ;;  %v39_v20 = vld [vmem:[%s825_s0 + $0xc0] sm:$0xff]  ;;  %v40_v22 = vld [vmem:[%s825_s0 + $0xc8] sm:$0xff]  ;;  %v25_v23 = vld [vmem:[%s825_s0 + $0x50] sm:$0xff] }
  0x12   :  { %567 = vmatprep.mubr.msk.f32.mxu1 %vm56_vm3, %v37_v16  ;;  %v41_v24 = vld [vmem:[%s825_s0 + $0xd0] sm:$0xff]  ;;  %v26_v25 = vld [vmem:[%s825_s0 + $0x58] sm:$0xff]  ;;  %v27_v27 = vld [vmem:[%s825_s0 + $0x60] sm:$0xff] }
  0x13   :  { %v42_v26 = vld [vmem:[%s825_s0 + $0xd8] sm:$0xff]  ;;  %v43_v28 = vld [vmem:[%s825_s0 + $0xe0] sm:$0xff]  ;;  %v28_v29 = vld [vmem:[%s825_s0 + $0x68] sm:$0xff] }
  0x14   :  { %544 = vmatmul.mubr.msk.f32.gmra.mrb[6].mxu0 %vm56_vm3, %v22_v17  ;;  %v44_v30 = vld [vmem:[%s825_s0 + $0xe8] sm:$0xff]  ;;  %v29_v31 = vld [vmem:[%s825_s0 + $0x70] sm:$0xff]  ;;  %v30_v33 = vld [vmem:[%s825_s0 + $0x78] sm:$0xff] }
  0x15   :  { %568 = vmatmul.mubr.msk.f32.gmra.mrb[6].mxu1 %vm56_vm3, %v38_v18  ;;  %546 = vmatprep.mubr.msk.f32.mxu0 %vm56_vm3, %v23_v19  ;;  %v45_v32 = vld [vmem:[%s825_s0 + $0xf0] sm:$0xff]  ;;  %v46_v34 = vld [vmem:[%s825_s0 + $0xf8] sm:$0xff]  ;;  %v779_v35 = vld [vmem:[%s827_s2] ss:$0 sm:$0xff]  ;;  %s619_s0 = smov [#allocation2]  }
  0x16   :  { %570 = vmatprep.mubr.msk.f32.mxu1 %vm56_vm3, %v39_v20  ;;  %s451_s2 = sshll.u32 %s619_s0, 4  ;;  %s452_s2 = int_to_ptr.vmem [resolvable:$true] %s451_s2 }
  0x17   :  { %s594_s25 = scalar_lea.vmem %s452_s2, 4096  ;;  %p599_p1 = scmp.lt.s32.totalorder %s452_s2, %s452_s2 }
  0x18   :  { %547 = vmatmul.mubr.msk.f32.gmra.mrb[8].mxu0 %vm56_vm3, %v24_v21  ;;  %p595_p0 = scmp.ne.s32.totalorder %s452_s2, %s594_s25  ;;  %p600_p2 = scmp.lt.s32.totalorder %s594_s25, %s594_s25 }
  0x19   :  { %571 = vmatmul.mubr.msk.f32.gmra.mrb[8].mxu1 %vm56_vm3, %v40_v22  ;;  %549 = vmatprep.mubr.msk.f32.mxu0 %vm56_vm3, %v25_v23 }
  0x1a   :  { %573 = vmatprep.mubr.msk.f32.mxu1 %vm56_vm3, %v41_v24  ;;  %p601_p3 = por %p600_p2, %p599_p1 }
  0x1c   :  { %550 = vmatmul.mubr.msk.f32.gmra.mrb[10].mxu0 %vm56_vm3, %v26_v25  ;;  %p602_p4 = pnand %p601_p3, %p595_p0 }
  0x1d   :  { %574 = vmatmul.mubr.msk.f32.gmra.mrb[10].mxu1 %vm56_vm3, %v42_v26  ;;  %552 = vmatprep.mubr.msk.f32.mxu0 %vm56_vm3, %v27_v27 }
  0x1e   :  { %576 = vmatprep.mubr.msk.f32.mxu1 %vm56_vm3, %v43_v28 }
  0x20   :  { %553 = vmatmul.mubr.msk.f32.gmra.mrb[12].mxu0 %vm56_vm3, %v28_v29 }
  0x21   :  { %577 = vmatmul.mubr.msk.f32.gmra.mrb[12].mxu1 %vm56_vm3, %v44_v30  ;;  %555 = vmatprep.mubr.msk.f32.mxu0 %vm56_vm3, %v29_v31 }
  0x22   :  { %579 = vmatprep.mubr.msk.f32.mxu1 %vm56_vm3, %v45_v32 }
  0x24   :  { %556 = vmatmul.mubr.msk.f32.gmra.mrb[14].mxu0 %vm56_vm3, %v30_v33 }
  0x25   :  { %580 = vmatmul.mubr.msk.f32.gmra.mrb[14].mxu1 %vm56_vm3, %v46_v34 }
  0xdb   :  { %v536_v36 = vpop.f32.mrb[0].mxu0 }
  0xdc   :  { %v560_v37 = vpop.f32.mrb[0].mxu1  ;;  %v229_v38 = vadd.f32 %v536_v36, %v779_v35  ;;  %v223_v40 = vpop.f32.mrb[1].mxu0 }
  0xdd   :  { %v309_v39 = vadd.f32 %v560_v37, %v779_v35  ;;  %v303_v41 = vpop.f32.mrb[1].mxu1  ;;  %v224_v42 = vadd.f32 %v779_v35, %v223_v40 }
  0xde   :  { %v304_v43 = vadd.f32 %v779_v35, %v303_v41  ;;  %v383_v44 = vmax.f32 %v229_v38, 0.0 }
  0xdf   :  { %v399_v45 = vmax.f32 %v309_v39, 0.0  ;;  %v382_v46 = vmax.f32 %v224_v42, 0.0  ;;  %v539_v48 = vpop.f32.mrb[2].mxu0 }
  0xe0   :  { %v398_v47 = vmax.f32 %v304_v43, 0.0  ;;  %v563_v49 = vpop.f32.mrb[2].mxu1  ;;  %415 = vst [vmem:[#allocation2 + $0x8] sm:$0xff] %v383_v44  ;;  %v239_v50 = vadd.f32 %v539_v48, %v779_v35  ;;  %v233_v52 = vpop.f32.mrb[3].mxu0 }
  0xe1   :  { %431 = vst [vmem:[#allocation2 + $0x88] sm:$0xff] %v399_v45  ;;  %v319_v51 = vadd.f32 %v563_v49, %v779_v35  ;;  %v313_v53 = vpop.f32.mrb[3].mxu1  ;;  %414 = vst [vmem:[#allocation2] sm:$0xff] %v382_v46  ;;  %v234_v54 = vadd.f32 %v779_v35, %v233_v52 }
  0xe2   :  { %430 = vst [vmem:[#allocation2 + $0x80] sm:$0xff] %v398_v47  ;;  %v314_v55 = vadd.f32 %v779_v35, %v313_v53  ;;  %v385_v56 = vmax.f32 %v239_v50, 0.0 }
  0xe3   :  { %v401_v57 = vmax.f32 %v319_v51, 0.0  ;;  %v384_v58 = vmax.f32 %v234_v54, 0.0  ;;  %v542_v60 = vpop.f32.mrb[4].mxu0 }
  0xe4   :  { %v400_v59 = vmax.f32 %v314_v55, 0.0  ;;  %v566_v61 = vpop.f32.mrb[4].mxu1  ;;  %417 = vst [vmem:[#allocation2 + $0x18] sm:$0xff] %v385_v56  ;;  %v249_v62 = vadd.f32 %v542_v60, %v779_v35  ;;  %v243_v0 = vpop.f32.mrb[5].mxu0 }
  0xe5   :  { %433 = vst [vmem:[#allocation2 + $0x98] sm:$0xff] %v401_v57  ;;  %v329_v63 = vadd.f32 %v566_v61, %v779_v35  ;;  %v323_v1 = vpop.f32.mrb[5].mxu1  ;;  %416 = vst [vmem:[#allocation2 + $0x10] sm:$0xff] %v384_v58  ;;  %v244_v2 = vadd.f32 %v779_v35, %v243_v0 }
  0xe6   :  { %432 = vst [vmem:[#allocation2 + $0x90] sm:$0xff] %v400_v59  ;;  %v324_v3 = vadd.f32 %v779_v35, %v323_v1  ;;  %v387_v4 = vmax.f32 %v249_v62, 0.0 }
  0xe7   :  { %v403_v5 = vmax.f32 %v329_v63, 0.0  ;;  %v386_v6 = vmax.f32 %v244_v2, 0.0  ;;  %v545_v8 = vpop.f32.mrb[6].mxu0 }
  0xe8   :  { %v402_v7 = vmax.f32 %v324_v3, 0.0  ;;  %v569_v9 = vpop.f32.mrb[6].mxu1  ;;  %419 = vst [vmem:[#allocation2 + $0x28] sm:$0xff] %v387_v4  ;;  %v259_v10 = vadd.f32 %v545_v8, %v779_v35  ;;  %v253_v12 = vpop.f32.mrb[7].mxu0 }
  0xe9   :  { %435 = vst [vmem:[#allocation2 + $0xa8] sm:$0xff] %v403_v5  ;;  %v339_v11 = vadd.f32 %v569_v9, %v779_v35  ;;  %v333_v13 = vpop.f32.mrb[7].mxu1  ;;  %418 = vst [vmem:[#allocation2 + $0x20] sm:$0xff] %v386_v6  ;;  %v254_v14 = vadd.f32 %v779_v35, %v253_v12 }
  0xea   :  { %434 = vst [vmem:[#allocation2 + $0xa0] sm:$0xff] %v402_v7  ;;  %v334_v15 = vadd.f32 %v779_v35, %v333_v13  ;;  %v389_v16 = vmax.f32 %v259_v10, 0.0 }
  0xeb   :  { %v405_v17 = vmax.f32 %v339_v11, 0.0  ;;  %v388_v18 = vmax.f32 %v254_v14, 0.0  ;;  %v548_v20 = vpop.f32.mrb[8].mxu0 }
  0xec   :  { %v404_v19 = vmax.f32 %v334_v15, 0.0  ;;  %v572_v21 = vpop.f32.mrb[8].mxu1  ;;  %421 = vst [vmem:[#allocation2 + $0x38] sm:$0xff] %v389_v16  ;;  %v269_v22 = vadd.f32 %v548_v20, %v779_v35  ;;  %v263_v24 = vpop.f32.mrb[9].mxu0 }
  0xed   :  { %437 = vst [vmem:[#allocation2 + $0xb8] sm:$0xff] %v405_v17  ;;  %v349_v23 = vadd.f32 %v572_v21, %v779_v35  ;;  %v343_v25 = vpop.f32.mrb[9].mxu1  ;;  %420 = vst [vmem:[#allocation2 + $0x30] sm:$0xff] %v388_v18  ;;  %v264_v26 = vadd.f32 %v779_v35, %v263_v24 }
  0xee   :  { %436 = vst [vmem:[#allocation2 + $0xb0] sm:$0xff] %v404_v19  ;;  %v344_v27 = vadd.f32 %v779_v35, %v343_v25  ;;  %v391_v28 = vmax.f32 %v269_v22, 0.0 }
  0xef   :  { %v407_v29 = vmax.f32 %v349_v23, 0.0  ;;  %v390_v30 = vmax.f32 %v264_v26, 0.0  ;;  %v551_v32 = vpop.f32.mrb[10].mxu0 }
  0xf0   :  { %v406_v31 = vmax.f32 %v344_v27, 0.0  ;;  %v575_v33 = vpop.f32.mrb[10].mxu1  ;;  %423 = vst [vmem:[#allocation2 + $0x48] sm:$0xff] %v391_v28  ;;  %v279_v34 = vadd.f32 %v551_v32, %v779_v35  ;;  %v273_v37 = vpop.f32.mrb[11].mxu0 }
  0xf1   :  { %439 = vst [vmem:[#allocation2 + $0xc8] sm:$0xff] %v407_v29  ;;  %v359_v36 = vadd.f32 %v575_v33, %v779_v35  ;;  %v353_v38 = vpop.f32.mrb[11].mxu1  ;;  %422 = vst [vmem:[#allocation2 + $0x40] sm:$0xff] %v390_v30  ;;  %v274_v39 = vadd.f32 %v779_v35, %v273_v37 }
  0xf2   :  { %438 = vst [vmem:[#allocation2 + $0xc0] sm:$0xff] %v406_v31  ;;  %v354_v40 = vadd.f32 %v779_v35, %v353_v38  ;;  %v393_v41 = vmax.f32 %v279_v34, 0.0 }
  0xf3   :  { %v409_v42 = vmax.f32 %v359_v36, 0.0  ;;  %v392_v43 = vmax.f32 %v274_v39, 0.0  ;;  %v554_v45 = vpop.f32.mrb[12].mxu0 }
  0xf4   :  { %v408_v44 = vmax.f32 %v354_v40, 0.0  ;;  %v578_v46 = vpop.f32.mrb[12].mxu1  ;;  %425 = vst [vmem:[#allocation2 + $0x58] sm:$0xff] %v393_v41  ;;  %v289_v47 = vadd.f32 %v554_v45, %v779_v35  ;;  %v283_v49 = vpop.f32.mrb[13].mxu0 }
  0xf5   :  { %441 = vst [vmem:[#allocation2 + $0xd8] sm:$0xff] %v409_v42  ;;  %v369_v48 = vadd.f32 %v578_v46, %v779_v35  ;;  %v363_v50 = vpop.f32.mrb[13].mxu1  ;;  %424 = vst [vmem:[#allocation2 + $0x50] sm:$0xff] %v392_v43  ;;  %v284_v51 = vadd.f32 %v779_v35, %v283_v49 }
  0xf6   :  { %440 = vst [vmem:[#allocation2 + $0xd0] sm:$0xff] %v408_v44  ;;  %v364_v52 = vadd.f32 %v779_v35, %v363_v50  ;;  %v395_v53 = vmax.f32 %v289_v47, 0.0 }
  0xf7   :  { %v411_v54 = vmax.f32 %v369_v48, 0.0  ;;  %v394_v55 = vmax.f32 %v284_v51, 0.0  ;;  %v557_v57 = vpop.f32.mrb[14].mxu0 }
  0xf8   :  { %v410_v56 = vmax.f32 %v364_v52, 0.0  ;;  %v581_v58 = vpop.f32.mrb[14].mxu1  ;;  %427 = vst [vmem:[#allocation2 + $0x68] sm:$0xff] %v395_v53  ;;  %v299_v59 = vadd.f32 %v557_v57, %v779_v35  ;;  %v293_v61 = vpop.f32.mrb[15].mxu0 }
  0xf9   :  { %443 = vst [vmem:[#allocation2 + $0xe8] sm:$0xff] %v411_v54  ;;  %v379_v60 = vadd.f32 %v581_v58, %v779_v35  ;;  %v373_v62 = vpop.f32.mrb[15].mxu1  ;;  %426 = vst [vmem:[#allocation2 + $0x60] sm:$0xff] %v394_v55  ;;  %v294_v63 = vadd.f32 %v779_v35, %v293_v61 }
  0xfa   :  { %442 = vst [vmem:[#allocation2 + $0xe0] sm:$0xff] %v410_v56  ;;  %v374_v0 = vadd.f32 %v779_v35, %v373_v62  ;;  %v397_v1 = vmax.f32 %v299_v59, 0.0 }
  0xfb   :  { %v413_v2 = vmax.f32 %v379_v60, 0.0  ;;  %v396_v3 = vmax.f32 %v294_v63, 0.0 }
  0xfc   :  { %v412_v4 = vmax.f32 %v374_v0, 0.0  ;;  %429 = vst [vmem:[#allocation2 + $0x78] sm:$0xff] %v397_v1 }
  0xfd   :  { %445 = vst [vmem:[#allocation2 + $0xf8] sm:$0xff] %v413_v2  ;;  %428 = vst [vmem:[#allocation2 + $0x70] sm:$0xff] %v396_v3 }
  0xfe   :  { %444 = vst [vmem:[#allocation2 + $0xf0] sm:$0xff] %v412_v4 }
  0xff   :  { %605 = shalt.err (!%p602_p4)
}
 0x100   :  { %s606_s28 = scalar_lea.hbm %s828_s3, 4096 }
 0x101   :  { %p607_p5 = scmp.ne.s32.totalorder %s828_s3, %s606_s28  ;;  %p610_p6 = scmp.lt.u32.totalorder %s606_s28, %s828_s3 }
 0x103   :  { %p612_p7 = pnand %p610_p6, %p607_p5 }
 0x105   :  { %615 = shalt.err (!%p612_p7)
}
 0x106   :  { %s620_s6 = smov 128   ;;  %s621_s7 = smov 8  }
 0x107   :  { %457 = dma.vmem_to_hbm [thread:$0]  %s452_s2, 4096, %s828_s3, [#allocation3], %s620_s6, %s620_s6, %s621_s7  }
 0x108   :  { %616 = dma.done.wait [#allocation3], 4096  }
 0x109   :  { %617 = vsyncadd [#allocation3], 4294963200 }
 0x10a   :  { %461 = vsyncpa [#allocation3], 1 }

</bundles_post_ra>
